<compile_context>
chip_gen: v6e
topology: v6e:2x2x1
jax: 0.10.0
libtpu: 0.0.40
codegen_flags: <defaults>
</compile_context>

<pallas_src>
import math

import jax
import jax.numpy as jnp
from jax.experimental import pallas as pl
from jax.experimental.pallas import tpu as pltpu

# ----- model hyper-parameters (small, consistent with the module's forward) -----
BATCH = 8
INPUT_DIM = 128     # original uses 5000; small deterministic synthetic size
HIDDEN_DIM = 32     # original uses 64
OUTPUT_DIM = 2
NUM_LAYERS = 2      # fixed at 2 in the reference module
FC_PAD = 128        # lane-dense padded width of the final Linear output

H = HIDDEN_DIM


# --------------------------------------------------------------------------- #
# Kernel
# --------------------------------------------------------------------------- #
def _lstm_classifier_kernel(x_ref, w0_ref, b0_ref, w1_ref, b1_ref,
                            wfc_ref, bfc_ref, out_ref):
    """Fused forward: 2 bidirectional LSTM-cell layers (zero state) + padded Linear."""

    def fused_bidir_cell(inp_bf16, w_ref, b_ref):
        # One MXU dot per layer covering both directions and the 3 live gates.
        # Fused gate columns: [i_f | i_b | o_f | o_b | g_f | g_b], each H wide.
        gates = jnp.dot(inp_bf16, w_ref[...],
                        preferred_element_type=jnp.float32) + b_ref[...]
        sig = jax.nn.sigmoid(gates[:, :4 * H])      # lane-dense 128-wide sigmoid block
        g = jnp.tanh(gates[:, 4 * H:])              # 2H-wide tanh block
        i = sig[:, :2 * H]                          # [sig(i_f) | sig(i_b)]
        o = sig[:, 2 * H:]                          # [sig(o_f) | sig(o_b)]
        c = i * g                                   # f-gate * c0 == 0 already dropped
        return o * jnp.tanh(c)                      # (B, 2H) = [h_fwd | h_bwd], no concat

    # x arrives f32; the bf16 cast is a VPU pack hidden under the layer-0 matmul.
    x = x_ref[...].astype(jnp.bfloat16)                     # (B, D_in)
    y0 = fused_bidir_cell(x, w0_ref, b0_ref)                # f32 (B, 2H)
    hn = fused_bidir_cell(y0.astype(jnp.bfloat16), w1_ref, b1_ref)
    # Dropout (eval) == identity; final Linear padded to 128 lane-dense columns.
    out_ref[...] = (jnp.dot(hn.astype(jnp.bfloat16), wfc_ref[...],
                            preferred_element_type=jnp.float32)
                    + bfc_ref[...])


# --------------------------------------------------------------------------- #
# One-time parameter preparation (NOT on the per-call forward path)
# --------------------------------------------------------------------------- #
def _fuse_layer(w_f, b_f, w_b, b_b):
    """PyTorch (4H, in) gate order [i, f, g, o] per direction ->
    fused (in, 6H) bf16 weight with columns [i_f i_b o_f o_b g_f g_b] and a
    matching (1, 6H) f32 bias.  The dead f-gate columns are dropped."""
    def wgate(w, k):
        return w[k * H:(k + 1) * H, :].T            # (in, H)

    def bgate(b, k):
        return b[k * H:(k + 1) * H]

    w = jnp.concatenate([wgate(w_f, 0), wgate(w_b, 0),    # i_f, i_b
                         wgate(w_f, 3), wgate(w_b, 3),    # o_f, o_b
                         wgate(w_f, 2), wgate(w_b, 2)],   # g_f, g_b
                        axis=1)
    b = jnp.concatenate([bgate(b_f, 0), bgate(b_b, 0),
                         bgate(b_f, 3), bgate(b_b, 3),
                         bgate(b_f, 2), bgate(b_b, 2)], axis=0)
    return w.astype(jnp.bfloat16), b.astype(jnp.float32)[None, :]


def prepare_params(params):
    """Fuse directions / drop dead gate / pad fc ONCE at param-load time.
    The returned tuple feeds the kernel directly with zero per-call prep."""
    (w0f, b0f, w0b, b0b, w1f, b1f, w1b, b1b, w_fc, b_fc) = params

    w0, b0 = _fuse_layer(w0f, b0f, w0b, b0b)        # (D_in, 6H) bf16, (1, 6H) f32
    w1, b1 = _fuse_layer(w1f, b1f, w1b, b1b)        # (2H, 6H)  bf16, (1, 6H) f32

    # Pad the tiny fc output (2H -> OUTPUT_DIM) to a lane-dense 128-wide slab.
    wfc = jnp.zeros((2 * H, FC_PAD), jnp.float32).at[:, :OUTPUT_DIM].set(w_fc.T)
    bfc = jnp.zeros((FC_PAD,), jnp.float32).at[:OUTPUT_DIM].set(b_fc)

    prepared = (w0, b0, w1, b1, wfc.astype(jnp.bfloat16), bfc[None, :])
    return jax.tree_util.tree_map(jax.block_until_ready, prepared)


# --------------------------------------------------------------------------- #
# Forward (per-call path: one pallas_call + a fused slice)
# --------------------------------------------------------------------------- #
@jax.jit
def lstm_classifier_forward(x, prepared):
    w0, b0, w1, b1, wfc, bfc = prepared

    vmem = pl.BlockSpec(memory_space=pltpu.MemorySpace.VMEM)
    out_padded = pl.pallas_call(
        _lstm_classifier_kernel,
        out_shape=jax.ShapeDtypeStruct((x.shape[0], FC_PAD), jnp.float32),
        in_specs=[vmem] * 7,
        out_specs=vmem,
    )(x, w0, b0, w1, b1, wfc, bfc)
    # Slice fuses inside this jit; the in-kernel store stays lane-dense.
    return out_padded[:, :OUTPUT_DIM]


# --------------------------------------------------------------------------- #
# Init + pure-JAX reference
# --------------------------------------------------------------------------- #
def init_params(key):
    """Deterministic init mimicking PyTorch's U(-1/sqrt(H), 1/sqrt(H)); PyTorch layout."""
    bound = 1.0 / math.sqrt(H)
    keys = jax.random.split(key, 16)
    u = lambda k, shape: jax.random.uniform(k, shape, jnp.float32, -bound, bound)

    # layer 0 (forward / backward): W_ih (4H, D_in), combined bias b_ih + b_hh (4H,)
    w_ih_l0_f = u(keys[0], (4 * H, INPUT_DIM))
    b_l0_f = u(keys[1], (4 * H,)) + u(keys[2], (4 * H,))
    w_ih_l0_b = u(keys[3], (4 * H, INPUT_DIM))
    b_l0_b = u(keys[4], (4 * H,)) + u(keys[5], (4 * H,))

    # layer 1 (forward / backward): input is 2H (bidirectional concat of layer 0)
    w_ih_l1_f = u(keys[6], (4 * H, 2 * H))
    b_l1_f = u(keys[7], (4 * H,)) + u(keys[8], (4 * H,))
    w_ih_l1_b = u(keys[9], (4 * H, 2 * H))
    b_l1_b = u(keys[10], (4 * H,)) + u(keys[11], (4 * H,))

    # final Linear(2H -> OUTPUT_DIM)
    fc_bound = 1.0 / math.sqrt(2 * H)
    w_fc = jax.random.uniform(keys[12], (OUTPUT_DIM, 2 * H), jnp.float32,
                              -fc_bound, fc_bound)
    b_fc = jax.random.uniform(keys[13], (OUTPUT_DIM,), jnp.float32,
                              -fc_bound, fc_bound)

    return (w_ih_l0_f, b_l0_f, w_ih_l0_b, b_l0_b,
            w_ih_l1_f, b_l1_f, w_ih_l1_b, b_l1_b,
            w_fc, b_fc)


def reference_forward(x, params):
    """Pure-JAX f32 reference of the exact PyTorch math, for a correctness check."""
    (w0f, b0f, w0b, b0b, w1f, b1f, w1b, b1b, w_fc, b_fc) = params

    def cell(inp, w, b):
        g = inp @ w.T + b
        i, f, gg, o = (g[:, :H], g[:, H:2 * H], g[:, 2 * H:3 * H], g[:, 3 * H:])
        c = jax.nn.sigmoid(f) * 0.0 + jax.nn.sigmoid(i) * jnp.tanh(gg)  # c0 == 0
        return jax.nn.sigmoid(o) * jnp.tanh(c)

    y0 = jnp.concatenate([cell(x, w0f, b0f), cell(x, w0b, b0b)], axis=1)
    hn = jnp.concatenate([cell(y0, w1f, b1f), cell(y0, w1b, b1b)], axis=1)
    return hn @ w_fc.T + b_fc


if __name__ == "__main__":
    key = jax.random.PRNGKey(0)
    k_x, k_p = jax.random.split(key)

    x = jax.random.normal(k_x, (BATCH, INPUT_DIM), jnp.float32)
    params = init_params(k_p)

    # One-time weight prep (off the per-call forward path).
    prepared = prepare_params(params)

    out = lstm_classifier_forward(x, prepared)
    out = jax.block_until_ready(out)

    ref = reference_forward(x, params)
    assert out.shape == (BATCH, OUTPUT_DIM)
    # bf16 MXU operands => relaxed tolerance vs. the f32 reference.
    assert jnp.allclose(out, ref, atol=5e-2, rtol=5e-2), (
        f"max abs diff = {jnp.max(jnp.abs(out - ref))}")

    print("KERNEL_OK")
</pallas_src>

<mosaic_0001>
module attributes {stable_mosaic.version = 11 : i64} {
  func.func @_lstm_classifier_kernel(%arg0: memref<8x128xf32, #tpu.memory_space<vmem>>, %arg1: memref<128x192xbf16, #tpu.memory_space<vmem>>, %arg2: memref<1x192xf32, #tpu.memory_space<vmem>>, %arg3: memref<64x192xbf16, #tpu.memory_space<vmem>>, %arg4: memref<1x192xf32, #tpu.memory_space<vmem>>, %arg5: memref<64x128xbf16, #tpu.memory_space<vmem>>, %arg6: memref<1x128xf32, #tpu.memory_space<vmem>>, %arg7: memref<8x128xf32, #tpu.memory_space<vmem>>) attributes {dimension_semantics = [], scalar_prefetch = 0 : i64, scratch_operands = 0 : i64, tpu.core_type = #tpu.core_type<tc>} {
    %c0 = arith.constant 0 : index
    %c0_0 = arith.constant 0 : index
    %0 = vector.load %arg0[%c0, %c0_0] : memref<8x128xf32, #tpu.memory_space<vmem>>, vector<8x128xf32>
    %1 = arith.truncf %0 : vector<8x128xf32> to vector<8x128xbf16>
    %c0_1 = arith.constant 0 : index
    %c0_2 = arith.constant 0 : index
    %2 = vector.load %arg1[%c0_1, %c0_2] : memref<128x192xbf16, #tpu.memory_space<vmem>>, vector<128x192xbf16>
    %cst = arith.constant dense<0.000000e+00> : vector<8x192xf32>
    %3 = tpu.matmul %1, %2, %cst {dimension_numbers = #tpu.dot_dimension_numbers<[1], [0], [0], [1], [0, 0, 1, 1], [], []>} : vector<8x128xbf16>, vector<128x192xbf16>, vector<8x192xf32> -> vector<8x192xf32>
    %c0_3 = arith.constant 0 : index
    %c0_4 = arith.constant 0 : index
    %4 = vector.load %arg2[%c0_3, %c0_4] : memref<1x192xf32, #tpu.memory_space<vmem>>, vector<1x192xf32>
    %5 = vector.broadcast %4 : vector<1x192xf32> to vector<8x192xf32>
    %6 = arith.addf %3, %5 : vector<8x192xf32>
    %7 = vector.extract_strided_slice %6 {offsets = [0, 0], sizes = [8, 128], strides = [1, 1]} : vector<8x192xf32> to vector<8x128xf32>
    %8 = arith.negf %7 : vector<8x128xf32>
    %9 = math.exp %8 : vector<8x128xf32>
    %cst_5 = arith.constant 1.000000e+00 : f32
    %10 = vector.broadcast %cst_5 : f32 to vector<8x128xf32>
    %11 = arith.addf %10, %9 : vector<8x128xf32>
    %12 = arith.divf %10, %11 : vector<8x128xf32>
    %13 = vector.extract_strided_slice %6 {offsets = [0, 128], sizes = [8, 64], strides = [1, 1]} : vector<8x192xf32> to vector<8x64xf32>
    %14 = math.tanh %13 : vector<8x64xf32>
    %15 = vector.extract_strided_slice %12 {offsets = [0, 0], sizes = [8, 64], strides = [1, 1]} : vector<8x128xf32> to vector<8x64xf32>
    %16 = vector.extract_strided_slice %12 {offsets = [0, 64], sizes = [8, 64], strides = [1, 1]} : vector<8x128xf32> to vector<8x64xf32>
    %17 = arith.mulf %15, %14 : vector<8x64xf32>
    %18 = math.tanh %17 : vector<8x64xf32>
    %19 = arith.mulf %16, %18 : vector<8x64xf32>
    %20 = arith.truncf %19 : vector<8x64xf32> to vector<8x64xbf16>
    %c0_6 = arith.constant 0 : index
    %c0_7 = arith.constant 0 : index
    %21 = vector.load %arg3[%c0_6, %c0_7] : memref<64x192xbf16, #tpu.memory_space<vmem>>, vector<64x192xbf16>
    %cst_8 = arith.constant dense<0.000000e+00> : vector<8x192xf32>
    %22 = tpu.matmul %20, %21, %cst_8 {dimension_numbers = #tpu.dot_dimension_numbers<[1], [0], [0], [1], [0, 0, 1, 1], [], []>} : vector<8x64xbf16>, vector<64x192xbf16>, vector<8x192xf32> -> vector<8x192xf32>
    %c0_9 = arith.constant 0 : index
    %c0_10 = arith.constant 0 : index
    %23 = vector.load %arg4[%c0_9, %c0_10] : memref<1x192xf32, #tpu.memory_space<vmem>>, vector<1x192xf32>
    %24 = vector.broadcast %23 : vector<1x192xf32> to vector<8x192xf32>
    %25 = arith.addf %22, %24 : vector<8x192xf32>
    %26 = vector.extract_strided_slice %25 {offsets = [0, 0], sizes = [8, 128], strides = [1, 1]} : vector<8x192xf32> to vector<8x128xf32>
    %27 = arith.negf %26 : vector<8x128xf32>
    %28 = math.exp %27 : vector<8x128xf32>
    %cst_11 = arith.constant 1.000000e+00 : f32
    %29 = vector.broadcast %cst_11 : f32 to vector<8x128xf32>
    %30 = arith.addf %29, %28 : vector<8x128xf32>
    %31 = arith.divf %29, %30 : vector<8x128xf32>
    %32 = vector.extract_strided_slice %25 {offsets = [0, 128], sizes = [8, 64], strides = [1, 1]} : vector<8x192xf32> to vector<8x64xf32>
    %33 = math.tanh %32 : vector<8x64xf32>
    %34 = vector.extract_strided_slice %31 {offsets = [0, 0], sizes = [8, 64], strides = [1, 1]} : vector<8x128xf32> to vector<8x64xf32>
    %35 = vector.extract_strided_slice %31 {offsets = [0, 64], sizes = [8, 64], strides = [1, 1]} : vector<8x128xf32> to vector<8x64xf32>
    %36 = arith.mulf %34, %33 : vector<8x64xf32>
    %37 = math.tanh %36 : vector<8x64xf32>
    %38 = arith.mulf %35, %37 : vector<8x64xf32>
    %39 = arith.truncf %38 : vector<8x64xf32> to vector<8x64xbf16>
    %c0_12 = arith.constant 0 : index
    %c0_13 = arith.constant 0 : index
    %40 = vector.load %arg5[%c0_12, %c0_13] : memref<64x128xbf16, #tpu.memory_space<vmem>>, vector<64x128xbf16>
    %cst_14 = arith.constant dense<0.000000e+00> : vector<8x128xf32>
    %41 = tpu.matmul %39, %40, %cst_14 {dimension_numbers = #tpu.dot_dimension_numbers<[1], [0], [0], [1], [0, 0, 1, 1], [], []>} : vector<8x64xbf16>, vector<64x128xbf16>, vector<8x128xf32> -> vector<8x128xf32>
    %c0_15 = arith.constant 0 : index
    %c0_16 = arith.constant 0 : index
    %42 = vector.load %arg6[%c0_15, %c0_16] : memref<1x128xf32, #tpu.memory_space<vmem>>, vector<1x128xf32>
    %43 = vector.broadcast %42 : vector<1x128xf32> to vector<8x128xf32>
    %44 = arith.addf %41, %43 : vector<8x128xf32>
    %c0_17 = arith.constant 0 : index
    %c0_18 = arith.constant 0 : index
    %45 = vector.load %arg7[%c0_17, %c0_18] : memref<8x128xf32, #tpu.memory_space<vmem>>, vector<8x128xf32>
    tpu.vector_store %arg7[%c0_17, %c0_18], %44 {strides = array<i32>} : memref<8x128xf32, #tpu.memory_space<vmem>>, vector<8x128xf32>,
    return
  }
}

</mosaic_0001>

<bundles_post_ra>
// kernel: lstm_classifier_forward.1
= control target key start
LH: loop header
LB: loop body
LE: loop exit
PB: predicated region body
PF: predicated region fallthrough
CT: control target
= control target key end

     0   :  { %v516_v1 = vmov 0   ;;  %v47_v19 = vlaneseq  ;;  %s517_s23 = smov 64   ;;  %vm256_vm0 = vcmask 523264   ;;  %vm519_vm1 = vmmov 0   ;;  %s665_s1 = inlined_call_operand.vmem [shape: bf16[128,192], index: 1, kind: input, shape index: {}]   ;;  %s666_s0 = inlined_call_operand.vmem [shape: f32[8,128], index: 0, kind: input, shape index: {}]   ;;  %s667_s2 = inlined_call_operand.vmem [shape: f32[1,192], index: 2, kind: input, shape index: {}]   ;;  %s668_s3 = inlined_call_operand.vmem [shape: bf16[64,192], index: 3, kind: input, shape index: {}]   ;;  %s669_s4 = inlined_call_operand.vmem [shape: f32[1,192], index: 4, kind: input, shape index: {}]   ;;  %s670_s5 = inlined_call_operand.vmem [shape: bf16[64,128], index: 5, kind: input, shape index: {}]   ;;  %s671_s6 = inlined_call_operand.vmem [shape: f32[1,128], index: 6, kind: input, shape index: {}]   ;;  %s672_s7 = inlined_call_operand.vmem [shape: f32[8,128], index: 7, kind: output, shape index: {}]  }
   0x1   :  { %v460_v0 = vld [vmem:[%s665_s1 + $0x74] ss:$8 sps:$4 sm:$0xff]   ;;  %169 = vmatprep.mubr.bf16.mxu0 %v516_v1  ;;  %292 = vmatprep.mubr.bf16.mxu1 %v516_v1  ;;  %v462_v2 = vld [vmem:[%s665_s1 + $0x70] ss:$8 sps:$4 sm:$0xff]   ;;  %v463_v3 = vld [vmem:[%s665_s1 + $0x64] ss:$8 sps:$4 sm:$0xff]  }
   0x2   :  { %137 = vmatprep.subr.bf16.mxu0 %v460_v0  ;;  %v465_v4 = vld [vmem:[%s665_s1 + $0x60] ss:$8 sps:$4 sm:$0xff]   ;;  %v466_v5 = vld [vmem:[%s665_s1 + $0x54] ss:$8 sps:$4 sm:$0xff]   ;;  %v468_v6 = vld [vmem:[%s665_s1 + $0x50] ss:$8 sps:$4 sm:$0xff]  }
   0x3   :  { %138 = vmatpush1.bf16.msra.mxu0 %v462_v2  ;;  %v469_v7 = vld [vmem:[%s665_s1 + $0x44] ss:$8 sps:$4 sm:$0xff]   ;;  %v471_v8 = vld [vmem:[%s665_s1 + $0x40] ss:$8 sps:$4 sm:$0xff]   ;;  %v472_v9 = vld [vmem:[%s665_s1 + $0x34] ss:$8 sps:$4 sm:$0xff]  }
   0x4   :  { %139 = vmatprep.subr.bf16.mxu0 %v463_v3  ;;  %v474_v10 = vld [vmem:[%s665_s1 + $0x30] ss:$8 sps:$4 sm:$0xff]   ;;  %v475_v11 = vld [vmem:[%s665_s1 + $0x24] ss:$8 sps:$4 sm:$0xff]   ;;  %v477_v12 = vld [vmem:[%s665_s1 + $0x20] ss:$8 sps:$4 sm:$0xff]  }
   0x5   :  { %v478_v13 = vld [vmem:[%s665_s1 + $0x14] ss:$8 sps:$4 sm:$0xff]   ;;  %v480_v14 = vld [vmem:[%s665_s1 + $0x10] ss:$8 sps:$4 sm:$0xff]   ;;  %v481_v15 = vld [vmem:[%s665_s1 + $0x4] ss:$8 sps:$4 sm:$0xff]  }
   0x6   :  { %v483_v16 = vld [vmem:[%s665_s1] ss:$8 sps:$4 sm:$0xff]   ;;  %v48_v20 = vshrl.u32 %v47_v19, 7  ;;  %v484_v38 = vld [vmem:[%s668_s3 + $0x34] ss:$8 sps:$4 sm:$0xff]   ;;  %v518_v2 = vmov 0.0  }
   0x7   :  { %140 = vmatpush1.bf16.msra.mxu0 %v465_v4  ;;  %v27_v17 = vld [vmem:[%s666_s0] sm:$0xff]  ;;  %v486_v39 = vld [vmem:[%s668_s3 + $0x30] ss:$8 sps:$4 sm:$0xff]   ;;  %268 = vmatprep.subr.bf16.mxu1 %v484_v38  ;;  %v490_v42 = vld [vmem:[%s668_s3 + $0x14] ss:$8 sps:$4 sm:$0xff]  }
   0x8   :  { %141 = vmatprep.subr.bf16.mxu0 %v466_v5  ;;  %v28_v18 = vpack.c.bf16 %v27_v17, %v27_v17  ;;  %v49_v21 = vsub.s32 0, %v48_v20  ;;  %v45_v22 = vld [vmem:[%s667_s2] sm:$0x3]  ;;  %v53_v30 = vsub.s32 1, %v48_v20  ;;  %v487_v40 = vld [vmem:[%s668_s3 + $0x24] ss:$8 sps:$4 sm:$0xff]   ;;  %269 = vmatpush1.bf16.msra.mxu1 %v486_v39 }
   0x9   :  { %v489_v41 = vld [vmem:[%s668_s3 + $0x20] ss:$8 sps:$4 sm:$0xff]   ;;  %270 = vmatprep.subr.bf16.mxu1 %v487_v40  ;;  %v492_v44 = vld [vmem:[%s668_s3 + $0x10] ss:$8 sps:$4 sm:$0xff]   ;;  %v493_v45 = vld [vmem:[%s668_s3 + $0x4] ss:$8 sps:$4 sm:$0xff]  }
   0xa   :  { %v50_v23 = vrot.slane %v45_v22, %v49_v21  ;;  %v54_v31 = vrot.slane %v45_v22, %v53_v30  ;;  %v495_v46 = vld [vmem:[%s668_s3] ss:$8 sps:$4 sm:$0xff]   ;;  %v496_v3 = vld [vmem:[%s670_s5 + $0x18] sm:$0xff]   ;;  %v497_v4 = vld [vmem:[%s670_s5 + $0x10] sm:$0xff]  }
   0xb   :  { %142 = vmatpush1.bf16.msra.mxu0 %v468_v6  ;;  %v201_v51 = vld [vmem:[%s669_s4] sm:$0x3]  ;;  %v498_v5 = vld [vmem:[%s670_s5 + $0x8] sm:$0xff]  }
   0xc   :  { %143 = vmatprep.subr.bf16.mxu0 %v469_v7  ;;  %271 = vmatpush1.bf16.msra.mxu1 %v489_v41  ;;  %v206_v52 = vrot.slane %v201_v51, %v49_v21  ;;  %v210_v59 = vrot.slane %v201_v51, %v53_v30  ;;  %v499_v7 = vld [vmem:[%s670_s5] sm:$0xff]  }
   0xd   :  { %272 = vmatprep.subr.bf16.mxu1 %v490_v42 }
   0xf   :  { %144 = vmatpush1.bf16.msra.mxu0 %v471_v8 }
  0x10   :  { %145 = vmatprep.subr.bf16.mxu0 %v472_v9  ;;  %273 = vmatpush1.bf16.msra.mxu1 %v492_v44 }
  0x11   :  { %274 = vmatprep.subr.bf16.mxu1 %v493_v45 }
  0x13   :  { %146 = vmatpush1.bf16.msra.mxu0 %v474_v10 }
  0x14   :  { %147 = vmatprep.subr.bf16.mxu0 %v475_v11  ;;  %275 = vmatpush1.bf16.msra.mxu1 %v495_v46 }
  0x15   :  { %444 = vmatprep.subr.bf16.mxu1 %v518_v2 }
  0x17   :  { %148 = vmatpush1.bf16.msra.mxu0 %v477_v12  ;;  %v433_v12 = vld [vmem:[%s671_s6] ss:$0 sm:$0xff] }
  0x18   :  { %149 = vmatprep.subr.bf16.mxu0 %v478_v13 }
  0x1b   :  { %150 = vmatpush1.bf16.msra.mxu0 %v480_v14 }
  0x1c   :  { %151 = vmatprep.subr.bf16.mxu0 %v481_v15 }
  0x1f   :  { %152 = vmatpush1.bf16.msra.mxu0 %v483_v16 }
  0x22   :  { %170 = vmatmul.mubr.bf16.vlgmr.msra.gmra.mxu0 %v28_v18 }
  0xe2   :  { %v171_v24 = vpop.f32.mrf.mxu0 }
  0xe3   :  { %v172_v25 = vadd.f32 %v171_v24, %v50_v23 }
  0xe4   :  { %v173_v26 = vpop.f32.mrf.mxu0 }
  0xe5   :  { %v422_v27 = vmul.f32 -1.442695, %v172_v25  ;;  %v174_v32 = vadd.f32 %v173_v26, %v54_v31 }
  0xe6   :  { %v175_v28 = vpop.f32.mrf.mxu0 }
  0xe7   :  { %500 = vpow2.f32 %v422_v27 }
  0xe8   :  { %v176_v29 = vpop.f32.mrf.mxu0  ;;  %502 = vtanh.f32 %v174_v32 }
  0xf4   :  { %v501_v33 = vpop.eup %500 }
  0xf5   :  { %v181_v34 = vadd.f32 1.0, %v501_v33  ;;  %v503_v35 = vpop.eup %502 }
  0xf7   :  { %504 = vrcp.f32 %v181_v34 }
 0x104   :  { %v505_v36 = vpop.eup %504 }
 0x105   :  { %v185_v37 = vmul.f32 %v505_v36, %v503_v35 }
 0x107   :  { %506 = vtanh.f32 %v185_v37 }
 0x114   :  { %v507_v43 = vpop.eup %506 }
 0x115   :  { %188 = vrot.lane.b32.xlu0 %v507_v43, %s517_s23 }
 0x187   :  { %v189_v47 = vpop.permute.xlu0 %188 }
 0x188   :  { %v191_v48 = vmul.f32 %v505_v36, %v189_v47 }
 0x18a   :  { %v192_v49 = vpack.c.bf16 %v191_v48, %v191_v48 }
 0x18c   :  { %214 = vrot.lane.b32.xlu0 %v192_v49, %s517_s23 }
 0x1fe   :  { %v215_v50 = vpop.permute.xlu0 %214 }
 0x1ff   :  { %431 = vmatmul.mubr.msk.bf16.vlgmr.msra.gmra.mxu1 %vm256_vm0, %v215_v50 }
 0x200   :  { %452 = vmatprep.mubr.msk.bf16.mxu1 %vm519_vm1, %v518_v2  ;;  %445 = vmatpush3.bf16.msra.mxu1 %v496_v3 }
 0x201   :  { %446 = vmatprep.subr.bf16.mxu1 %v518_v2 }
 0x204   :  { %447 = vmatpush3.bf16.msra.mxu1 %v497_v4 }
 0x205   :  { %448 = vmatprep.subr.bf16.mxu1 %v518_v2 }
 0x208   :  { %449 = vmatpush3.bf16.msra.mxu1 %v498_v5 }
 0x209   :  { %450 = vmatprep.subr.bf16.mxu1 %v518_v2 }
 0x20c   :  { %451 = vmatpush3.bf16.msra.mxu1 %v499_v7 }
 0x2bf   :  { %v294_v53 = vpop.f32.mrf.mxu1 }
 0x2c0   :  { %v295_v54 = vadd.f32 %v294_v53, %v206_v52 }
 0x2c1   :  { %v296_v55 = vpop.f32.mrf.mxu1 }
 0x2c2   :  { %v432_v56 = vmul.f32 -1.442695, %v295_v54  ;;  %v297_v60 = vadd.f32 %v296_v55, %v210_v59 }
 0x2c3   :  { %v298_v57 = vpop.f32.mrf.mxu1 }
 0x2c4   :  { %508 = vpow2.f32 %v432_v56 }
 0x2c5   :  { %v299_v58 = vpop.f32.mrf.mxu1  ;;  %510 = vtanh.f32 %v297_v60 }
 0x2d1   :  { %v509_v61 = vpop.eup %508 }
 0x2d2   :  { %v304_v62 = vadd.f32 1.0, %v509_v61  ;;  %v511_v63 = vpop.eup %510 }
 0x2d4   :  { %512 = vrcp.f32 %v304_v62 }
 0x2e1   :  { %v513_v0 = vpop.eup %512 }
 0x2e2   :  { %v308_v1 = vmul.f32 %v513_v0, %v511_v63 }
 0x2e4   :  { %514 = vtanh.f32 %v308_v1 }
 0x2f1   :  { %v515_v6 = vpop.eup %514 }
 0x2f2   :  { %311 = vrot.lane.b32.xlu1 %v515_v6, %s517_s23 }
 0x364   :  { %v312_v8 = vpop.permute.xlu1 %311 }
 0x365   :  { %v314_v9 = vmul.f32 %v513_v0, %v312_v8 }
 0x367   :  { %v315_v10 = vpack.c.bf16 %v314_v9, %v314_v9 }
 0x369   :  { %332 = vrot.lane.b32.xlu1 %v315_v10, %s517_s23 }
 0x3db   :  { %v333_v11 = vpop.permute.xlu1 %332 }
 0x3dc   :  { %453 = vmatmul.mubr.msk.bf16.vlgmr.msra.gmra.mxu1 %vm256_vm0, %v333_v11 }
 0x49c   :  { %v395_v13 = vpop.f32.mrf.mxu1 }
 0x49d   :  { %v396_v14 = vadd.f32 %v433_v12, %v395_v13 }
 0x49e   :  { %v454_v15 = vpop.f32.mrf.mxu1 }
 0x49f   :  { %401 = vst [vmem:[%s672_s7] sm:$0xff] %v396_v14 }
 0x4a0   :  { %v398_v16 = vpop.f32.mrf.mxu1 }
 0x4a2   :  { %v455_v17 = vpop.f32.mrf.mxu1 }

</bundles_post_ra>
